<compile_context>
chip_gen: v6e
topology: v6e:2x2x1
jax: 0.10.0
libtpu: 0.0.40
codegen_flags: <defaults>
</compile_context>

<pallas_src>
import math
import functools

import jax
import jax.numpy as jnp
from jax.experimental import pallas as pl
from jax.experimental.pallas import tpu as pltpu


def _round_up(n, m):
    return ((n + m - 1) // m) * m


def _stack_rnn_kernel(xh_ref, w_xh_ref, b_h_ref, w_hr_ref, b_hr_ref,
                      out_ref, *, stacks):
    """Whole StackRNN forward in one invocation (layer loop unrolled).

    Packed-lane layout (k_pad = 128 lanes):
        x lives in lanes [0, 96), h lives in lanes [96, 128).

        gate  = [x;h] @ W_xh + (b_ih + b_hh)   -> hidden lanes only (bf16 MXU, f32 acc)
        h'    = tanh(gate)                     -> zeros outside hidden lanes (f32)
        x'    = h' @ W_hr + b_hr               -> x lanes only (bf16 MXU, f32 acc)
        [x;h]_next = x' + h'                   -> disjoint lanes, plain vector add
    """
    xh = xh_ref[...]                                      # bf16 (b_pad, k_pad)
    for l in range(stacks):                               # static, unrolled
        gate = jnp.dot(xh, w_xh_ref[l],
                       preferred_element_type=jnp.float32) + b_h_ref[l]
        h_f32 = jnp.tanh(gate)                            # f32 VPU/EUP
        x_f32 = jnp.dot(h_f32.astype(jnp.bfloat16), w_hr_ref[l],
                        preferred_element_type=jnp.float32) + b_hr_ref[l]
        if l < stacks - 1:
            xh = (x_f32 + h_f32).astype(jnp.bfloat16)     # next layer's [x;h]
    # x lanes and h lanes are disjoint -> one lane-dense f32 store holds both.
    out_ref[...] = x_f32 + h_f32


def stack_rnn_forward(x, hidden_state, packed, *, input_size, hidden_size,
                      output_size, h_off, k_pad, b_pad):
    """Fused StackRNN forward.

    packed: dict with
        w_xh (stacks, k_pad, k_pad)  bf16  -- W_ih rows [0,layer_in), W_hh rows
                                              [h_off,h_off+hidden), both writing
                                              cols [h_off,h_off+hidden); rest 0
        b_h  (stacks, 1, k_pad)      f32   -- b_ih + b_hh in hidden lanes; rest 0
        w_hr (stacks, k_pad, k_pad)  bf16  -- W_hr rows [h_off,h_off+hidden),
                                              cols [0,layer_out); rest 0
        b_hr (stacks, 1, k_pad)      f32   -- b_hr in lanes [0,layer_out); rest 0
    Returns (output, hidden_state) sliced back to logical shapes.
    """
    batch = x.shape[0]
    stacks = packed["w_xh"].shape[0]

    # Pre-concatenated, padded [x ; h] input tile (bf16 = MXU input dtype).
    xh0 = jnp.zeros((b_pad, k_pad), jnp.float32)
    xh0 = xh0.at[:batch, :input_size].set(x)
    xh0 = xh0.at[:batch, h_off:h_off + hidden_size].set(hidden_state)
    xh0 = xh0.astype(jnp.bfloat16)

    kernel = functools.partial(_stack_rnn_kernel, stacks=stacks)

    # Cost estimate from LOGICAL (unpadded) sizes.
    gate_size = 3 * hidden_size
    flops = 0
    weight_bytes = 0
    for l in range(stacks):
        layer_in = input_size if l == 0 else gate_size
        layer_out = output_size if l == stacks - 1 else gate_size
        flops += 2 * batch * (layer_in * hidden_size
                              + hidden_size * hidden_size
                              + hidden_size * layer_out)
        weight_bytes += 2 * (layer_in * hidden_size
                             + hidden_size * hidden_size
                             + hidden_size * layer_out)          # bf16 weights
        weight_bytes += 4 * (hidden_size + layer_out)            # f32 biases
    transcendentals = stacks * batch * hidden_size
    bytes_accessed = (weight_bytes
                      + 4 * batch * (input_size + hidden_size)   # inputs
                      + 4 * batch * (output_size + hidden_size)) # outputs

    vmem = pl.BlockSpec(memory_space=pltpu.MemorySpace.VMEM)
    out_p = pl.pallas_call(
        kernel,
        out_shape=jax.ShapeDtypeStruct((b_pad, k_pad), jnp.float32),
        in_specs=[vmem] * 5,
        out_specs=vmem,
        cost_estimate=pl.CostEstimate(flops=flops,
                                      transcendentals=transcendentals,
                                      bytes_accessed=bytes_accessed),
    )(xh0, packed["w_xh"], packed["b_h"], packed["w_hr"], packed["b_hr"])

    output = out_p[:batch, :output_size]
    hidden = out_p[:batch, h_off:h_off + hidden_size]
    # TODO(synk): the PyTorch reference returns `(output, hidden)` where
    # `hidden` is an undefined name (NameError); we return the running
    # hidden_state instead.
    return output, hidden


# ----------------------------- parameter setup -----------------------------

def _linear_params(key, in_features, out_features):
    """Deterministic init mimicking nn.Linear defaults (uniform +-1/sqrt(fan_in)).
    Weight is stored as (in_features, out_features) so the kernel does x @ W."""
    k_w, k_b = jax.random.split(key)
    bound = 1.0 / math.sqrt(in_features)
    w = jax.random.uniform(k_w, (in_features, out_features),
                           minval=-bound, maxval=bound, dtype=jnp.float32)
    b = jax.random.uniform(k_b, (1, out_features),
                           minval=-bound, maxval=bound, dtype=jnp.float32)
    return w, b


def make_stack_rnn_params(key, input_size, hidden_size, output_size, stacks=2):
    gate_size = 3 * hidden_size
    params = []
    for layer in range(stacks):
        layer_in = input_size if layer == 0 else gate_size
        layer_out = output_size if layer == stacks - 1 else gate_size
        key, k1, k2, k3 = jax.random.split(key, 4)
        w_ih, b_ih = _linear_params(k1, layer_in, hidden_size)
        w_hh, b_hh = _linear_params(k2, hidden_size, hidden_size)
        w_hr, b_hr = _linear_params(k3, hidden_size, layer_out)
        params.append(dict(w_ih=w_ih, b_ih=b_ih,
                           w_hh=w_hh, b_hh=b_hh,
                           w_hr=w_hr, b_hr=b_hr))
    return params


def pack_params(params, *, hidden_size, h_off, k_pad):
    """Stack per-layer params on a leading layer axis in the packed-lane layout,
    merge W_ih/W_hh into one combined gate weight (pre-summed bias), zero-pad
    to (k_pad, k_pad) tiles, and cast weights to bf16 (biases stay f32).

    Invariant: all padded weight rows/cols and bias lanes stay zero so padded
    x lanes / hidden lanes never contaminate the real math and the x / h
    halves of the packed [x ; h] tile remain disjoint."""
    stacks = len(params)
    w_xh = jnp.zeros((stacks, k_pad, k_pad), jnp.float32)
    b_h = jnp.zeros((stacks, 1, k_pad), jnp.float32)
    w_hr = jnp.zeros((stacks, k_pad, k_pad), jnp.float32)
    b_hr = jnp.zeros((stacks, 1, k_pad), jnp.float32)
    h_lo, h_hi = h_off, h_off + hidden_size
    for l, p in enumerate(params):
        layer_in = p["w_ih"].shape[0]
        layer_out = p["w_hr"].shape[1]
        # x @ W_ih and h @ W_hh both land in the hidden lanes [h_lo, h_hi).
        w_xh = w_xh.at[l, :layer_in, h_lo:h_hi].set(p["w_ih"])
        w_xh = w_xh.at[l, h_lo:h_hi, h_lo:h_hi].set(p["w_hh"])
        b_h = b_h.at[l, 0, h_lo:h_hi].set(p["b_ih"][0] + p["b_hh"][0])
        # h @ W_hr lands in the x lanes [0, layer_out).
        w_hr = w_hr.at[l, h_lo:h_hi, :layer_out].set(p["w_hr"])
        b_hr = b_hr.at[l, 0, :layer_out].set(p["b_hr"][0])
    return dict(w_xh=w_xh.astype(jnp.bfloat16), b_h=b_h,
                w_hr=w_hr.astype(jnp.bfloat16), b_hr=b_hr)


def init_hidden(key, batch, hidden_size):
    # kaiming_uniform_ on (batch, hidden_size): bound = sqrt(6 / fan_in)
    bound = math.sqrt(6.0 / hidden_size)
    return jax.random.uniform(key, (batch, hidden_size),
                              minval=-bound, maxval=bound, dtype=jnp.float32)


if __name__ == "__main__":
    batch = 2
    input_size = 16
    hidden_size = 32
    output_size = 8
    stacks = 2
    gate_size = 3 * hidden_size

    # Packed-lane layout: x in lanes [0, x_lanes), h in lanes [h_off, h_off+hidden).
    x_lanes = max(input_size, gate_size, output_size)     # 96
    h_off = x_lanes
    k_pad = _round_up(x_lanes + hidden_size, 128)          # 128
    b_pad = _round_up(batch, 16)
    assert h_off + hidden_size <= k_pad

    root = jax.random.PRNGKey(0)
    k_params, k_x, k_h = jax.random.split(root, 3)

    params = make_stack_rnn_params(k_params, input_size, hidden_size,
                                   output_size, stacks=stacks)
    packed = pack_params(params, hidden_size=hidden_size, h_off=h_off,
                         k_pad=k_pad)
    x = jax.random.normal(k_x, (batch, input_size), dtype=jnp.float32)
    h0 = init_hidden(k_h, batch, hidden_size)

    output, hidden_state = stack_rnn_forward(
        x, h0, packed, input_size=input_size, hidden_size=hidden_size,
        output_size=output_size, h_off=h_off, k_pad=k_pad, b_pad=b_pad)
    jax.block_until_ready((output, hidden_state))

    assert output.shape == (batch, output_size)
    assert hidden_state.shape == (batch, hidden_size)

    # Reference 1: identical math (packed lanes, bf16 weights/state, f32
    # accumulate) in pure JAX -> tight tolerance.
    xh_ref = jnp.zeros((b_pad, k_pad), jnp.float32)
    xh_ref = xh_ref.at[:batch, :input_size].set(x)
    xh_ref = xh_ref.at[:batch, h_off:h_off + hidden_size].set(h0)
    xh_ref = xh_ref.astype(jnp.bfloat16)
    for l in range(stacks):
        gate = jnp.dot(xh_ref, packed["w_xh"][l],
                       preferred_element_type=jnp.float32) + packed["b_h"][l]
        h_f32 = jnp.tanh(gate)
        x_f32 = jnp.dot(h_f32.astype(jnp.bfloat16), packed["w_hr"][l],
                        preferred_element_type=jnp.float32) + packed["b_hr"][l]
        xh_ref = (x_f32 + h_f32).astype(jnp.bfloat16)
    out_ref_bf16 = x_f32[:batch, :output_size]
    h_ref_bf16 = h_f32[:batch, h_off:h_off + hidden_size]
    assert jnp.allclose(output, out_ref_bf16, atol=1e-4, rtol=1e-4)
    assert jnp.allclose(hidden_state, h_ref_bf16, atol=1e-4, rtol=1e-4)

    # Reference 2: original unpadded f32 semantics -> loose tolerance
    # (bf16 MXU inputs vs f32).
    x_f, h_f = x, h0
    for p in params:
        a = x_f @ p["w_ih"] + p["b_ih"]
        b = h_f @ p["w_hh"] + p["b_hh"]
        h_f = jnp.tanh(a + b)
        x_f = h_f @ p["w_hr"] + p["b_hr"]
    assert jnp.allclose(output, x_f, atol=5e-2, rtol=5e-2)
    assert jnp.allclose(hidden_state, h_f, atol=5e-2, rtol=5e-2)

    print("KERNEL_OK")
</pallas_src>

<mosaic_0001>
module attributes {stable_mosaic.version = 11 : i64} {
  func.func @_stack_rnn_kernel(%arg0: memref<16x128xbf16, #tpu.memory_space<vmem>>, %arg1: memref<2x128x128xbf16, #tpu.memory_space<vmem>>, %arg2: memref<2x1x128xf32, #tpu.memory_space<vmem>>, %arg3: memref<2x128x128xbf16, #tpu.memory_space<vmem>>, %arg4: memref<2x1x128xf32, #tpu.memory_space<vmem>>, %arg5: memref<16x128xf32, #tpu.memory_space<vmem>>) attributes {dimension_semantics = [], scalar_prefetch = 0 : i64, scratch_operands = 0 : i64, tpu.core_type = #tpu.core_type<tc>} {
    %c0 = arith.constant 0 : index
    %c0_0 = arith.constant 0 : index
    %0 = vector.load %arg0[%c0, %c0_0] : memref<16x128xbf16, #tpu.memory_space<vmem>>, vector<16x128xbf16>
    %c0_1 = arith.constant 0 : index
    %c0_2 = arith.constant 0 : index
    %c0_3 = arith.constant 0 : index
    %1 = vector.load %arg1[%c0_1, %c0_2, %c0_3] : memref<2x128x128xbf16, #tpu.memory_space<vmem>>, vector<1x128x128xbf16>
    %2 = vector.shape_cast %1 : vector<1x128x128xbf16> to vector<128x128xbf16>
    %cst = arith.constant dense<0.000000e+00> : vector<16x128xf32>
    %3 = tpu.matmul %0, %2, %cst {dimension_numbers = #tpu.dot_dimension_numbers<[1], [0], [0], [1], [0, 0, 1, 1], [], []>} : vector<16x128xbf16>, vector<128x128xbf16>, vector<16x128xf32> -> vector<16x128xf32>
    %c0_4 = arith.constant 0 : index
    %c0_5 = arith.constant 0 : index
    %c0_6 = arith.constant 0 : index
    %4 = vector.load %arg2[%c0_4, %c0_5, %c0_6] : memref<2x1x128xf32, #tpu.memory_space<vmem>>, vector<1x1x128xf32>
    %5 = vector.shape_cast %4 : vector<1x1x128xf32> to vector<1x128xf32>
    %6 = vector.broadcast %5 : vector<1x128xf32> to vector<16x128xf32>
    %7 = arith.addf %3, %6 : vector<16x128xf32>
    %8 = math.tanh %7 : vector<16x128xf32>
    %9 = arith.truncf %8 : vector<16x128xf32> to vector<16x128xbf16>
    %c0_7 = arith.constant 0 : index
    %c0_8 = arith.constant 0 : index
    %c0_9 = arith.constant 0 : index
    %10 = vector.load %arg3[%c0_7, %c0_8, %c0_9] : memref<2x128x128xbf16, #tpu.memory_space<vmem>>, vector<1x128x128xbf16>
    %11 = vector.shape_cast %10 : vector<1x128x128xbf16> to vector<128x128xbf16>
    %cst_10 = arith.constant dense<0.000000e+00> : vector<16x128xf32>
    %12 = tpu.matmul %9, %11, %cst_10 {dimension_numbers = #tpu.dot_dimension_numbers<[1], [0], [0], [1], [0, 0, 1, 1], [], []>} : vector<16x128xbf16>, vector<128x128xbf16>, vector<16x128xf32> -> vector<16x128xf32>
    %c0_11 = arith.constant 0 : index
    %c0_12 = arith.constant 0 : index
    %c0_13 = arith.constant 0 : index
    %13 = vector.load %arg4[%c0_11, %c0_12, %c0_13] : memref<2x1x128xf32, #tpu.memory_space<vmem>>, vector<1x1x128xf32>
    %14 = vector.shape_cast %13 : vector<1x1x128xf32> to vector<1x128xf32>
    %15 = vector.broadcast %14 : vector<1x128xf32> to vector<16x128xf32>
    %16 = arith.addf %12, %15 : vector<16x128xf32>
    %17 = arith.addf %16, %8 : vector<16x128xf32>
    %18 = arith.truncf %17 : vector<16x128xf32> to vector<16x128xbf16>
    %c1 = arith.constant 1 : index
    %c0_14 = arith.constant 0 : index
    %c0_15 = arith.constant 0 : index
    %19 = vector.load %arg1[%c1, %c0_14, %c0_15] : memref<2x128x128xbf16, #tpu.memory_space<vmem>>, vector<1x128x128xbf16>
    %20 = vector.shape_cast %19 : vector<1x128x128xbf16> to vector<128x128xbf16>
    %cst_16 = arith.constant dense<0.000000e+00> : vector<16x128xf32>
    %21 = tpu.matmul %18, %20, %cst_16 {dimension_numbers = #tpu.dot_dimension_numbers<[1], [0], [0], [1], [0, 0, 1, 1], [], []>} : vector<16x128xbf16>, vector<128x128xbf16>, vector<16x128xf32> -> vector<16x128xf32>
    %c1_17 = arith.constant 1 : index
    %c0_18 = arith.constant 0 : index
    %c0_19 = arith.constant 0 : index
    %22 = vector.load %arg2[%c1_17, %c0_18, %c0_19] : memref<2x1x128xf32, #tpu.memory_space<vmem>>, vector<1x1x128xf32>
    %23 = vector.shape_cast %22 : vector<1x1x128xf32> to vector<1x128xf32>
    %24 = vector.broadcast %23 : vector<1x128xf32> to vector<16x128xf32>
    %25 = arith.addf %21, %24 : vector<16x128xf32>
    %26 = math.tanh %25 : vector<16x128xf32>
    %27 = arith.truncf %26 : vector<16x128xf32> to vector<16x128xbf16>
    %c1_20 = arith.constant 1 : index
    %c0_21 = arith.constant 0 : index
    %c0_22 = arith.constant 0 : index
    %28 = vector.load %arg3[%c1_20, %c0_21, %c0_22] : memref<2x128x128xbf16, #tpu.memory_space<vmem>>, vector<1x128x128xbf16>
    %29 = vector.shape_cast %28 : vector<1x128x128xbf16> to vector<128x128xbf16>
    %cst_23 = arith.constant dense<0.000000e+00> : vector<16x128xf32>
    %30 = tpu.matmul %27, %29, %cst_23 {dimension_numbers = #tpu.dot_dimension_numbers<[1], [0], [0], [1], [0, 0, 1, 1], [], []>} : vector<16x128xbf16>, vector<128x128xbf16>, vector<16x128xf32> -> vector<16x128xf32>
    %c1_24 = arith.constant 1 : index
    %c0_25 = arith.constant 0 : index
    %c0_26 = arith.constant 0 : index
    %31 = vector.load %arg4[%c1_24, %c0_25, %c0_26] : memref<2x1x128xf32, #tpu.memory_space<vmem>>, vector<1x1x128xf32>
    %32 = vector.shape_cast %31 : vector<1x1x128xf32> to vector<1x128xf32>
    %33 = vector.broadcast %32 : vector<1x128xf32> to vector<16x128xf32>
    %34 = arith.addf %30, %33 : vector<16x128xf32>
    %35 = arith.addf %34, %26 : vector<16x128xf32>
    %c0_27 = arith.constant 0 : index
    %c0_28 = arith.constant 0 : index
    %36 = vector.load %arg5[%c0_27, %c0_28] : memref<16x128xf32, #tpu.memory_space<vmem>>, vector<16x128xf32>
    tpu.vector_store %arg5[%c0_27, %c0_28], %35 {strides = array<i32>} : memref<16x128xf32, #tpu.memory_space<vmem>>, vector<16x128xf32>,
    return
  }
}

</mosaic_0001>

<bundles_post_ra>
// kernel: tpu_custom_call.1
= control target key start
LH: loop header
LB: loop body
LE: loop exit
PB: predicated region body
PF: predicated region fallthrough
CT: control target
= control target key end

     0   :  { %10 = vsyncpa [#allocation3], 0  ;;  %s950_s0 = inlined_call_operand.hbm [shape: bf16[16,128], index: 0, kind: input, shape index: {}]   ;;  %s951_s1 = inlined_call_operand.hbm [shape: bf16[2,128,128], index: 1, kind: input, shape index: {}]   ;;  %s952_s2 = inlined_call_operand.vmem [shape: f32[2,1,128], index: 2, kind: input, shape index: {}]   ;;  %s953_s3 = inlined_call_operand.hbm [shape: bf16[2,128,128], index: 3, kind: input, shape index: {}]   ;;  %s954_s4 = inlined_call_operand.vmem [shape: f32[2,1,128], index: 4, kind: input, shape index: {}]   ;;  %s955_s5 = inlined_call_operand.hbm [shape: f32[16,128], index: 5, kind: output, shape index: {}]  }
   0x1   :  { %11 = vsyncpa [#allocation6], 0 }
   0x2   :  { %12 = vsyncpa [#allocation4], 0  ;;  %s846_s18 = smov [#allocation5]   ;;  %s847_s20 = smov [#allocation2]  }
   0x3   :  { %s30_s19 = sshll.u32 %s846_s18, 4  ;;  %s18_s21 = sshll.u32 %s847_s20, 4  ;;  %s31_s19 = int_to_ptr.vmem [resolvable:$true] %s30_s19  ;;  %s19_s21 = int_to_ptr.vmem [resolvable:$true] %s18_s21 }
   0x4   :  { %s768_s22 = scalar_lea.vmem %s31_s19, 2048  ;;  %p773_p1 = scmp.lt.s32.totalorder %s31_s19, %s31_s19 }
   0x5   :  { %p769_p0 = scmp.ne.s32.totalorder %s31_s19, %s768_s22  ;;  %p774_p2 = scmp.lt.s32.totalorder %s768_s22, %s768_s22 }
   0x7   :  { %p775_p3 = por %p774_p2, %p773_p1 }
   0x9   :  { %p776_p4 = pnand %p775_p3, %p769_p0 }
   0xb   :  { %779 = shalt.err (!%p776_p4)
}
   0xc   :  { %s848_s23 = smov 64   ;;  %s849_s24 = smov 4  }
   0xd   :  { %36 = dma.hbm_to_vmem [thread:$0]  %s951_s1, 2048, %s31_s19, [#allocation6], %s848_s23, %s848_s23, %s849_s24  }
   0xe   :  { %s788_s27 = scalar_lea.vmem %s19_s21, 128  ;;  %p793_p6 = scmp.lt.s32.totalorder %s19_s21, %s19_s21 }
   0xf   :  { %p789_p5 = scmp.ne.s32.totalorder %s19_s21, %s788_s27  ;;  %p794_p7 = scmp.lt.s32.totalorder %s788_s27, %s788_s27 }
  0x11   :  { %p795_p8 = por %p794_p7, %p793_p6 }
  0x13   :  { %p796_p9 = pnand %p795_p8, %p789_p5 }
  0x15   :  { %799 = shalt.err (!%p796_p9)
}
  0x16   :  { %24 = dma.hbm_to_vmem [thread:$0]  %s950_s0, 128, %s19_s21, [#allocation3], %s848_s23, %s848_s23, %s849_s24  }
  0x17   :  { %s850_s30 = smov [#allocation7]  }
  0x18   :  { %s44_s6 = sshll.u32 %s850_s30, 4  ;;  %s45_s6 = int_to_ptr.vmem [resolvable:$true] %s44_s6 }
  0x19   :  { %s808_s7 = scalar_lea.vmem %s45_s6, 2048  ;;  %p813_p11 = scmp.lt.s32.totalorder %s45_s6, %s45_s6 }
  0x1a   :  { %p809_p10 = scmp.ne.s32.totalorder %s45_s6, %s808_s7  ;;  %p814_p12 = scmp.lt.s32.totalorder %s808_s7, %s808_s7 }
  0x1c   :  { %p815_p13 = por %p814_p12, %p813_p11 }
  0x1e   :  { %p816_p0 = pnand %p815_p13, %p809_p10 }
  0x20   :  { %819 = shalt.err (!%p816_p0)
}
  0x21   :  { %50 = dma.hbm_to_vmem [thread:$0]  %s953_s3, 2048, %s45_s6, [#allocation6], %s848_s23, %s848_s23, %s849_s24  }
  0x22   :  { %840 = dma.done.wait [#allocation3], 128  }
  0x23   :  { %841 = vsyncadd [#allocation3], 4294967168 }
  0x24   :  { %842 = dma.done.wait [#allocation6], 4096  }
  0x25   :  { %843 = vsyncadd [#allocation6], 4294963200  ;;  %v851_v0 = vmov 0.0   ;;  %vm852_vm0 = vmmov 0   ;;  %v719_v1 = vld [vmem:[#allocation5 + $0x38] sm:$0xff]   ;;  %v720_v2 = vld [vmem:[#allocation5 + $0x30] sm:$0xff]  }
  0x26   :  { %629 = vmatprep.subr.bf16.mxu0 %v851_v0  ;;  %645 = vmatprep.mubr.msk.bf16.mxu0 %vm852_vm0, %v851_v0  ;;  %v721_v3 = vld [vmem:[#allocation5 + $0x28] sm:$0xff]   ;;  %v728_v4 = vld [vmem:[#allocation7 + $0x38] sm:$0xff]   ;;  %v722_v5 = vld [vmem:[#allocation5 + $0x20] sm:$0xff]  }
  0x27   :  { %649 = vmatprep.subr.bf16.mxu1 %v851_v0  ;;  %665 = vmatprep.mubr.msk.bf16.mxu1 %vm852_vm0, %v851_v0  ;;  %v729_v6 = vld [vmem:[#allocation7 + $0x30] sm:$0xff]   ;;  %v723_v7 = vld [vmem:[#allocation5 + $0x18] sm:$0xff]   ;;  %v725_v9 = vld [vmem:[#allocation5 + $0x8] sm:$0xff]  }
  0x28   :  { %630 = vmatpush3.bf16.msra.mxu0 %v719_v1  ;;  %650 = vmatpush3.bf16.msra.mxu1 %v728_v4  ;;  %v724_v8 = vld [vmem:[#allocation5 + $0x10] sm:$0xff]   ;;  %v726_v10 = vld [vmem:[#allocation5] sm:$0xff]   ;;  %v727_v11 = vld [vmem:[#allocation2] sm:$0xff]  }
  0x29   :  { %631 = vmatprep.subr.bf16.mxu0 %v851_v0  ;;  %651 = vmatprep.subr.bf16.mxu1 %v851_v0  ;;  %v730_v12 = vld [vmem:[#allocation7 + $0x28] sm:$0xff]   ;;  %v731_v13 = vld [vmem:[#allocation7 + $0x20] sm:$0xff]   ;;  %v732_v14 = vld [vmem:[#allocation7 + $0x18] sm:$0xff]  }
  0x2a   :  { %v733_v15 = vld [vmem:[#allocation7 + $0x10] sm:$0xff]   ;;  %v734_v16 = vld [vmem:[#allocation7 + $0x8] sm:$0xff]   ;;  %v735_v17 = vld [vmem:[#allocation7] sm:$0xff]  }
  0x2b   :  { %v736_v18 = vld [vmem:[#allocation5 + $0x78] sm:$0xff]   ;;  %v737_v19 = vld [vmem:[#allocation5 + $0x70] sm:$0xff]   ;;  %v738_v20 = vld [vmem:[#allocation5 + $0x68] sm:$0xff]  }
  0x2c   :  { %632 = vmatpush3.bf16.msra.mxu0 %v720_v2  ;;  %652 = vmatpush3.bf16.msra.mxu1 %v729_v6  ;;  %v739_v21 = vld [vmem:[#allocation5 + $0x60] sm:$0xff]   ;;  %v740_v22 = vld [vmem:[#allocation5 + $0x58] sm:$0xff]   ;;  %v741_v33 = vld [vmem:[#allocation5 + $0x50] sm:$0xff]  }
  0x2d   :  { %633 = vmatprep.subr.bf16.mxu0 %v851_v0  ;;  %653 = vmatprep.subr.bf16.mxu1 %v851_v0  ;;  %v554_v23 = vld [vmem:[%s952_s2] ss:$0 sm:$0xff]  ;;  %v742_v34 = vld [vmem:[#allocation5 + $0x48] sm:$0xff]   ;;  %v743_v35 = vld [vmem:[#allocation5 + $0x40] sm:$0xff]  }
  0x2e   :  { %v744_v36 = vld [vmem:[#allocation7 + $0x78] sm:$0xff]   ;;  %v745_v37 = vld [vmem:[#allocation7 + $0x70] sm:$0xff]   ;;  %v746_v48 = vld [vmem:[#allocation7 + $0x68] sm:$0xff]  }
  0x2f   :  { %v564_v38 = vld [vmem:[%s954_s4] ss:$0 sm:$0xff]  ;;  %v747_v49 = vld [vmem:[#allocation7 + $0x60] sm:$0xff]   ;;  %v749_v51 = vld [vmem:[#allocation7 + $0x50] sm:$0xff]  }
  0x30   :  { %634 = vmatpush3.bf16.msra.mxu0 %v721_v3  ;;  %654 = vmatpush3.bf16.msra.mxu1 %v730_v12  ;;  %v748_v50 = vld [vmem:[#allocation7 + $0x58] sm:$0xff]   ;;  %v750_v52 = vld [vmem:[#allocation7 + $0x48] sm:$0xff]   ;;  %v751_v53 = vld [vmem:[#allocation7 + $0x40] sm:$0xff]  }
  0x31   :  { %635 = vmatprep.subr.bf16.mxu0 %v851_v0  ;;  %655 = vmatprep.subr.bf16.mxu1 %v851_v0  ;;  %v574_v54 = vld [vmem:[%s952_s2 + $0x1] ss:$0 sm:$0xff]  ;;  %s853_s2 = smov [#allocation8]  }
  0x32   :  { %s541_s15 = sshll.u32 %s853_s2, 4  ;;  %s542_s15 = int_to_ptr.vmem [resolvable:$true] %s541_s15 }
  0x33   :  { %s820_s16 = scalar_lea.vmem %s542_s15, 256  ;;  %p825_p2 = scmp.lt.s32.totalorder %s542_s15, %s542_s15 }
  0x34   :  { %636 = vmatpush3.bf16.msra.mxu0 %v722_v5  ;;  %656 = vmatpush3.bf16.msra.mxu1 %v731_v13  ;;  %p821_p1 = scmp.ne.s32.totalorder %s542_s15, %s820_s16  ;;  %p826_p3 = scmp.lt.s32.totalorder %s820_s16, %s820_s16 }
  0x35   :  { %637 = vmatprep.subr.bf16.mxu0 %v851_v0  ;;  %657 = vmatprep.subr.bf16.mxu1 %v851_v0 }
  0x36   :  { %p827_p4 = por %p826_p3, %p825_p2 }
  0x38   :  { %638 = vmatpush3.bf16.msra.mxu0 %v723_v7  ;;  %658 = vmatpush3.bf16.msra.mxu1 %v732_v14  ;;  %p828_p5 = pnand %p827_p4, %p821_p1 }
  0x39   :  { %639 = vmatprep.subr.bf16.mxu0 %v851_v0  ;;  %659 = vmatprep.subr.bf16.mxu1 %v851_v0 }
  0x3c   :  { %640 = vmatpush3.bf16.msra.mxu0 %v724_v8  ;;  %660 = vmatpush3.bf16.msra.mxu1 %v733_v15 }
  0x3d   :  { %641 = vmatprep.subr.bf16.mxu0 %v851_v0  ;;  %661 = vmatprep.subr.bf16.mxu1 %v851_v0 }
  0x40   :  { %642 = vmatpush3.bf16.msra.mxu0 %v725_v9  ;;  %662 = vmatpush3.bf16.msra.mxu1 %v734_v16 }
  0x41   :  { %643 = vmatprep.subr.bf16.mxu0 %v851_v0  ;;  %663 = vmatprep.subr.bf16.mxu1 %v851_v0 }
  0x44   :  { %644 = vmatpush3.bf16.msra.mxu0 %v726_v10  ;;  %664 = vmatpush3.bf16.msra.mxu1 %v735_v17 }
  0x45   :  { %669 = vmatprep.subr.bf16.mxu0 %v851_v0  ;;  %689 = vmatprep.subr.bf16.mxu1 %v851_v0 }
  0x47   :  { %646 = vmatmul.mubr.bf16.vlgmr.msra.gmra.mxu0 %v727_v11 }
  0x48   :  { %685 = vmatprep.mubr.msk.bf16.mxu0 %vm852_vm0, %v851_v0  ;;  %670 = vmatpush3.bf16.msra.mxu0 %v736_v18 }
  0x49   :  { %671 = vmatprep.subr.bf16.mxu0 %v851_v0 }
  0x4c   :  { %672 = vmatpush3.bf16.msra.mxu0 %v737_v19 }
  0x4d   :  { %673 = vmatprep.subr.bf16.mxu0 %v851_v0 }
  0x50   :  { %674 = vmatpush3.bf16.msra.mxu0 %v738_v20 }
  0x51   :  { %675 = vmatprep.subr.bf16.mxu0 %v851_v0 }
  0x54   :  { %676 = vmatpush3.bf16.msra.mxu0 %v739_v21 }
  0x55   :  { %677 = vmatprep.subr.bf16.mxu0 %v851_v0 }
  0x58   :  { %678 = vmatpush3.bf16.msra.mxu0 %v740_v22 }
  0x59   :  { %679 = vmatprep.subr.bf16.mxu0 %v851_v0 }
  0x5c   :  { %680 = vmatpush3.bf16.msra.mxu0 %v741_v33 }
  0x5d   :  { %681 = vmatprep.subr.bf16.mxu0 %v851_v0 }
  0x60   :  { %682 = vmatpush3.bf16.msra.mxu0 %v742_v34 }
  0x61   :  { %683 = vmatprep.subr.bf16.mxu0 %v851_v0 }
  0x64   :  { %684 = vmatpush3.bf16.msra.mxu0 %v743_v35 }
 0x107   :  { %v176_v24 = vpop.f32.mrf.mxu0 }
 0x108   :  { %v177_v25 = vadd.f32 %v554_v23, %v176_v24 }
 0x109   :  { %v647_v26 = vpop.f32.mrf.mxu0 }
 0x10a   :  { %752 = vtanh.f32 %v177_v25 }
 0x10b   :  { %v179_v27 = vpop.f32.mrf.mxu0 }
 0x10c   :  { %v180_v28 = vadd.f32 %v554_v23, %v179_v27 }
 0x10d   :  { %v648_v29 = vpop.f32.mrf.mxu0 }
 0x10e   :  { %754 = vtanh.f32 %v180_v28 }
 0x117   :  { %v753_v30 = vpop.eup %752 }
 0x11b   :  { %v755_v31 = vpop.eup %754 }
 0x11c   :  { %v185_v32 = vpack.c.bf16 %v755_v31, %v753_v30 }
 0x11e   :  { %666 = vmatmul.mubr.bf16.vlgmr.msra.gmra.mxu1 %v185_v32 }
 0x11f   :  { %705 = vmatprep.mubr.msk.bf16.mxu1 %vm852_vm0, %v851_v0  ;;  %690 = vmatpush3.bf16.msra.mxu1 %v744_v36 }
 0x120   :  { %691 = vmatprep.subr.bf16.mxu1 %v851_v0 }
 0x123   :  { %692 = vmatpush3.bf16.msra.mxu1 %v745_v37 }
 0x124   :  { %693 = vmatprep.subr.bf16.mxu1 %v851_v0 }
 0x127   :  { %694 = vmatpush3.bf16.msra.mxu1 %v746_v48 }
 0x128   :  { %695 = vmatprep.subr.bf16.mxu1 %v851_v0 }
 0x12b   :  { %696 = vmatpush3.bf16.msra.mxu1 %v747_v49 }
 0x12c   :  { %697 = vmatprep.subr.bf16.mxu1 %v851_v0 }
 0x12f   :  { %698 = vmatpush3.bf16.msra.mxu1 %v748_v50 }
 0x130   :  { %699 = vmatprep.subr.bf16.mxu1 %v851_v0 }
 0x133   :  { %700 = vmatpush3.bf16.msra.mxu1 %v749_v51 }
 0x134   :  { %701 = vmatprep.subr.bf16.mxu1 %v851_v0 }
 0x137   :  { %702 = vmatpush3.bf16.msra.mxu1 %v750_v52 }
 0x138   :  { %703 = vmatprep.subr.bf16.mxu1 %v851_v0  ;;  %v584_v0 = vld [vmem:[%s954_s4 + $0x1] ss:$0 sm:$0xff] }
 0x13b   :  { %704 = vmatpush3.bf16.msra.mxu1 %v751_v53 }
 0x1de   :  { %v291_v39 = vpop.f32.mrf.mxu1 }
 0x1df   :  { %v292_v41 = vadd.f32 %v564_v38, %v291_v39 }
 0x1e0   :  { %v667_v40 = vpop.f32.mrf.mxu1 }
 0x1e1   :  { %v298_v45 = vadd.f32 %v753_v30, %v292_v41 }
 0x1e2   :  { %v294_v42 = vpop.f32.mrf.mxu1 }
 0x1e3   :  { %v295_v43 = vadd.f32 %v564_v38, %v294_v42 }
 0x1e4   :  { %v668_v44 = vpop.f32.mrf.mxu1 }
 0x1e5   :  { %v299_v46 = vadd.f32 %v755_v31, %v295_v43 }
 0x1e7   :  { %v300_v47 = vpack.c.bf16 %v299_v46, %v298_v45 }
 0x1e9   :  { %686 = vmatmul.mubr.bf16.vlgmr.msra.gmra.mxu0 %v300_v47 }
 0x2a9   :  { %v408_v55 = vpop.f32.mrf.mxu0 }
 0x2aa   :  { %v409_v56 = vadd.f32 %v574_v54, %v408_v55 }
 0x2ab   :  { %v687_v57 = vpop.f32.mrf.mxu0 }
 0x2ac   :  { %756 = vtanh.f32 %v409_v56 }
 0x2ad   :  { %v411_v58 = vpop.f32.mrf.mxu0 }
 0x2ae   :  { %v412_v59 = vadd.f32 %v574_v54, %v411_v58 }
 0x2af   :  { %v688_v60 = vpop.f32.mrf.mxu0 }
 0x2b0   :  { %758 = vtanh.f32 %v412_v59 }
 0x2b9   :  { %v757_v61 = vpop.eup %756 }
 0x2bd   :  { %v759_v62 = vpop.eup %758 }
 0x2be   :  { %v417_v63 = vpack.c.bf16 %v759_v62, %v757_v61 }
 0x2c0   :  { %706 = vmatmul.mubr.bf16.vlgmr.msra.gmra.mxu1 %v417_v63 }
 0x380   :  { %v525_v1 = vpop.f32.mrf.mxu1 }
 0x381   :  { %v526_v2 = vadd.f32 %v584_v0, %v525_v1 }
 0x382   :  { %v707_v3 = vpop.f32.mrf.mxu1 }
 0x383   :  { %v532_v4 = vadd.f32 %v757_v61, %v526_v2 }
 0x384   :  { %v528_v5 = vpop.f32.mrf.mxu1 }
 0x385   :  { %534 = vst [vmem:[#allocation8] sm:$0xff] %v532_v4  ;;  %v529_v6 = vadd.f32 %v584_v0, %v528_v5 }
 0x386   :  { %v708_v7 = vpop.f32.mrf.mxu1 }
 0x387   :  { %v533_v8 = vadd.f32 %v759_v62, %v529_v6 }
 0x389   :  { %535 = vst [vmem:[#allocation8 + $0x8] sm:$0xff] %v533_v8 }
 0x38a   :  { %831 = shalt.err (!%p828_p5)
}
 0x38b   :  { %s854_s4 = smov 128   ;;  %s855_s17 = smov 8  }
 0x38c   :  { %547 = dma.vmem_to_hbm [thread:$0]  %s542_s15, 256, %s955_s5, [#allocation4], %s854_s4, %s854_s4, %s855_s17  }
 0x38d   :  { %844 = dma.done.wait [#allocation4], 256  }
 0x38e   :  { %845 = vsyncadd [#allocation4], 4294967040 }
 0x38f   :  { %551 = vsyncpa [#allocation3], 1 }
 0x390   :  { %552 = vsyncpa [#allocation6], 1 }
 0x391   :  { %553 = vsyncpa [#allocation4], 1 }

</bundles_post_ra>
